<compile_context>
chip_gen: v7x
topology: tpu7x:2x2x1
jax: 0.10.0
libtpu: 0.0.40
codegen_flags: <defaults>
</compile_context>

<pallas_src>
import functools

import jax
import jax.numpy as jnp
from jax.experimental import pallas as pl
from jax.experimental.pallas import tpu as pltpu

LANE = 128      # last-dim (lane) alignment
SUBLANE = 8     # second-to-last-dim (sublane) alignment


def _round_up(x, m):
    return ((x + m - 1) // m) * m


# ---------------------------------------------------------------------------
# Kernel: one grid step == one RNN timestep.  Hidden state lives in the tail
# slice of the fused-operand VMEM scratch `x_ref` and persists across steps.
# ---------------------------------------------------------------------------
def core_rnn_kernel(g_ref, h0_ref, w_ref, b_ref, out_ref, x_ref, *, in_pad):
    t = pl.program_id(0)

    # Seed the resident hidden state once (tail slice of the fused operand).
    @pl.when(t == 0)
    def _():
        x_ref[:, in_pad:] = h0_ref[...]

    # Fresh glimpse goes into the head slice of the fused operand.
    x_ref[:, :in_pad] = g_ref[0]

    # Single fused MXU matmul: [g_t, h_{t-1}] @ [W_i^T ; W_h^T] + (b_i + b_h).
    h_new = jnp.maximum(
        jnp.dot(x_ref[...], w_ref[...], preferred_element_type=jnp.float32)
        + b_ref[...],
        0.0,
    )

    # Carry hidden state in VMEM for the next step; emit this step's h_t.
    x_ref[:, in_pad:] = h_new
    out_ref[0] = h_new.astype(out_ref.dtype)


# ---------------------------------------------------------------------------
# One-time parameter preparation (hoisted out of the hot path):
#   - transpose nn.Linear weights to [in, out]
#   - concatenate along K into a single [in_pad + h_pad, h_pad] matrix
#   - fold the two biases into one lane-padded row
# ---------------------------------------------------------------------------
def prepare_params(w_i2h, b_i2h, w_h2h, b_h2h):
    hidden_size, input_size = w_i2h.shape
    in_pad = _round_up(input_size, LANE)
    h_pad = _round_up(hidden_size, LANE)

    w_cat = jnp.zeros((in_pad + h_pad, h_pad), jnp.float32)
    w_cat = w_cat.at[:input_size, :hidden_size].set(
        jnp.transpose(w_i2h).astype(jnp.float32))
    w_cat = w_cat.at[in_pad:in_pad + hidden_size, :hidden_size].set(
        jnp.transpose(w_h2h).astype(jnp.float32))

    b_cat = jnp.zeros((1, h_pad), jnp.float32)
    b_cat = b_cat.at[0, :hidden_size].set((b_i2h + b_h2h).astype(jnp.float32))

    return {
        "w_cat": w_cat,
        "b_cat": b_cat,
        "input_size": input_size,
        "hidden_size": hidden_size,
        "in_pad": in_pad,
        "h_pad": h_pad,
    }


# ---------------------------------------------------------------------------
# Fused rollout: runs T RNN steps in a single pallas_call.
#   g_seq:        [T, B, input_size]
#   hidden_state: [B, hidden_size]   (initial hidden, e.g. zeros from reset())
# Returns h_seq [T, B, hidden_size]; h_seq[-1] is the final hidden state.
# ---------------------------------------------------------------------------
def core_network_rollout(params, g_seq, hidden_state):
    T, B, input_size = g_seq.shape
    assert input_size == params["input_size"]
    hidden_size = params["hidden_size"]
    in_pad, h_pad = params["in_pad"], params["h_pad"]
    b_pad = _round_up(B, SUBLANE)
    k_pad = in_pad + h_pad

    # Pad once (lane/sublane alignment); pad regions are zero so they never
    # contaminate the real rows/columns.
    g_p = jnp.zeros((T, b_pad, in_pad), jnp.float32)
    g_p = g_p.at[:, :B, :input_size].set(g_seq.astype(jnp.float32))
    h0_p = jnp.zeros((b_pad, h_pad), jnp.float32)
    h0_p = h0_p.at[:B, :hidden_size].set(hidden_state.astype(jnp.float32))

    kernel = functools.partial(core_rnn_kernel, in_pad=in_pad)

    # NOTE: for production-sized hidden dims (>=2k, esp. v7x 64 MiB VMEM)
    # the resident w_cat / out specs should be tiled along N and
    # vmem_limit_bytes raised; at these sizes whole-array residency is ideal.
    h_seq_p = pl.pallas_call(
        kernel,
        out_shape=jax.ShapeDtypeStruct((T, b_pad, h_pad), jnp.float32),
        grid=(T,),
        in_specs=[
            pl.BlockSpec((1, b_pad, in_pad), lambda t: (t, 0, 0)),   # g_t
            pl.BlockSpec((b_pad, h_pad), lambda t: (0, 0)),          # h0 (resident)
            pl.BlockSpec((k_pad, h_pad), lambda t: (0, 0)),          # W_cat (resident)
            pl.BlockSpec((1, h_pad), lambda t: (0, 0)),              # b_cat (resident)
        ],
        out_specs=pl.BlockSpec((1, b_pad, h_pad), lambda t: (t, 0, 0)),
        scratch_shapes=[pltpu.VMEM((b_pad, k_pad), jnp.float32)],    # [g_t | h] fused operand
        compiler_params=pltpu.CompilerParams(
            dimension_semantics=("arbitrary",)),
    )(g_p, h0_p, params["w_cat"], params["b_cat"])

    return h_seq_p[:, :B, :hidden_size]


# Single-step convenience wrapper (matches the PyTorch forward() signature;
# the caller carries the hidden state, as the stateful module does).
def core_network_forward(params, g_t, hidden_state):
    h_seq = core_network_rollout(params, g_t[None], hidden_state)
    return h_seq[0]


def init_params(key, input_size, hidden_size):
    """Deterministic init matching nn.Linear shapes (uniform +-1/sqrt(fan_in))."""
    k1, k2, k3, k4 = jax.random.split(key, 4)
    bound_i = 1.0 / jnp.sqrt(input_size)
    bound_h = 1.0 / jnp.sqrt(hidden_size)
    w_i2h = jax.random.uniform(k1, (hidden_size, input_size), jnp.float32,
                               -bound_i, bound_i)
    b_i2h = jax.random.uniform(k2, (hidden_size,), jnp.float32, -bound_i, bound_i)
    w_h2h = jax.random.uniform(k3, (hidden_size, hidden_size), jnp.float32,
                               -bound_h, bound_h)
    b_h2h = jax.random.uniform(k4, (hidden_size,), jnp.float32, -bound_h, bound_h)
    return w_i2h, b_i2h, w_h2h, b_h2h


if __name__ == "__main__":
    key = jax.random.PRNGKey(0)
    B, input_size, hidden_size, T = 2, 16, 32, 8

    k_params, k_g = jax.random.split(key)
    w_i2h, b_i2h, w_h2h, b_h2h = init_params(k_params, input_size, hidden_size)

    # Hoisted one-time layout prep (transpose/concat/pad of weights).
    params = prepare_params(w_i2h, b_i2h, w_h2h, b_h2h)

    g_seq = jax.random.normal(k_g, (T, B, input_size), jnp.float32)
    # self.reset(batch_size, device): hidden_state = zeros([B, hidden_size])
    hidden0 = jnp.zeros((B, hidden_size), jnp.float32)

    # Fused T-step rollout (single pallas_call).
    h_seq = jax.block_until_ready(core_network_rollout(params, g_seq, hidden0))

    # Single-step call (same semantics as the PyTorch forward()).
    h1_step = jax.block_until_ready(
        core_network_forward(params, g_seq[0], hidden0))

    # Pure-JAX reference (step-by-step, exactly like the PyTorch module).
    h_ref = hidden0
    refs = []
    for t in range(T):
        h_ref = jnp.maximum(
            g_seq[t] @ w_i2h.T + b_i2h + h_ref @ w_h2h.T + b_h2h, 0.0)
        refs.append(h_ref)
    ref_seq = jnp.stack(refs)

    assert h_seq.shape == (T, B, hidden_size)
    assert jnp.allclose(h_seq, ref_seq, atol=1e-4, rtol=1e-4), \
        "rollout mismatch vs reference"
    assert jnp.allclose(h1_step, ref_seq[0], atol=1e-4, rtol=1e-4), \
        "single-step mismatch vs reference"

    print("KERNEL_OK")
</pallas_src>

<mosaic_0001>
module attributes {stable_mosaic.version = 11 : i64} {
  func.func @core_rnn_kernel(%arg0: i32, %arg1: memref<1x8x128xf32, #tpu.memory_space<vmem>>, %arg2: memref<8x128xf32, #tpu.memory_space<vmem>>, %arg3: memref<256x128xf32, #tpu.memory_space<vmem>>, %arg4: memref<1x128xf32, #tpu.memory_space<vmem>>, %arg5: memref<1x8x128xf32, #tpu.memory_space<vmem>>, %arg6: memref<8x256xf32, #tpu.memory_space<vmem>>) attributes {dimension_semantics = [#tpu.dimension_semantics<arbitrary>], iteration_bounds = array<i64: 8>, scalar_prefetch = 0 : i64, scratch_operands = 1 : i64, tpu.core_type = #tpu.core_type<tc>, window_params = [{transform_indices = @transform_0, window_bounds = array<i64: 1, 8, 128>}, {pipeline_mode = #tpu.pipeline_mode<synchronous>, transform_indices = @transform_1, window_bounds = array<i64: 8, 128>}, {pipeline_mode = #tpu.pipeline_mode<synchronous>, transform_indices = @transform_2, window_bounds = array<i64: 256, 128>}, {pipeline_mode = #tpu.pipeline_mode<synchronous>, transform_indices = @transform_3, window_bounds = array<i64: 1, 128>}, {transform_indices = @transform_4, window_bounds = array<i64: 1, 8, 128>}]} {
    %c0_i32 = arith.constant 0 : i32
    %0 = arith.cmpi eq, %arg0, %c0_i32 : i32
    %1 = arith.extui %0 : i1 to i32
    %c0_i32_0 = arith.constant 0 : i32
    %2 = arith.cmpi ne, %1, %c0_i32_0 : i32
    scf.if %2 {
      %c0_16 = arith.constant 0 : index
      %c0_17 = arith.constant 0 : index
      %18 = vector.load %arg2[%c0_16, %c0_17] : memref<8x128xf32, #tpu.memory_space<vmem>>, vector<8x128xf32>
      %c0_18 = arith.constant 0 : index
      %c128_19 = arith.constant 128 : index
      %19 = vector.load %arg6[%c0_18, %c128_19] : memref<8x256xf32, #tpu.memory_space<vmem>>, vector<8x128xf32>
      tpu.vector_store %arg6[%c0_18, %c128_19], %18 {strides = array<i32>} : memref<8x256xf32, #tpu.memory_space<vmem>>, vector<8x128xf32>,
    } else {
    }
    %c0 = arith.constant 0 : index
    %c0_1 = arith.constant 0 : index
    %c0_2 = arith.constant 0 : index
    %3 = vector.load %arg1[%c0, %c0_1, %c0_2] : memref<1x8x128xf32, #tpu.memory_space<vmem>>, vector<1x8x128xf32>
    %4 = vector.shape_cast %3 : vector<1x8x128xf32> to vector<8x128xf32>
    %c0_3 = arith.constant 0 : index
    %c0_4 = arith.constant 0 : index
    %5 = vector.load %arg6[%c0_3, %c0_4] : memref<8x256xf32, #tpu.memory_space<vmem>>, vector<8x128xf32>
    tpu.vector_store %arg6[%c0_3, %c0_4], %4 {strides = array<i32>} : memref<8x256xf32, #tpu.memory_space<vmem>>, vector<8x128xf32>,
    %c0_5 = arith.constant 0 : index
    %c0_6 = arith.constant 0 : index
    %6 = vector.load %arg6[%c0_5, %c0_6] : memref<8x256xf32, #tpu.memory_space<vmem>>, vector<8x256xf32>
    %c0_7 = arith.constant 0 : index
    %c0_8 = arith.constant 0 : index
    %7 = vector.load %arg3[%c0_7, %c0_8] : memref<256x128xf32, #tpu.memory_space<vmem>>, vector<256x128xf32>
    %cst = arith.constant dense<0.000000e+00> : vector<8x128xf32>
    %8 = tpu.matmul %6, %7, %cst {dimension_numbers = #tpu.dot_dimension_numbers<[1], [0], [0], [1], [0, 0, 1, 1], [], []>} : vector<8x256xf32>, vector<256x128xf32>, vector<8x128xf32> -> vector<8x128xf32>
    %c0_9 = arith.constant 0 : index
    %c0_10 = arith.constant 0 : index
    %9 = vector.load %arg4[%c0_9, %c0_10] : memref<1x128xf32, #tpu.memory_space<vmem>>, vector<1x128xf32>
    %10 = vector.broadcast %9 : vector<1x128xf32> to vector<8x128xf32>
    %11 = arith.addf %8, %10 : vector<8x128xf32>
    %cst_11 = arith.constant 0.000000e+00 : f32
    %12 = vector.broadcast %cst_11 : f32 to vector<8x128xf32>
    %13 = arith.maximumf %11, %12 : vector<8x128xf32>
    %c0_12 = arith.constant 0 : index
    %c128 = arith.constant 128 : index
    %14 = vector.load %arg6[%c0_12, %c128] : memref<8x256xf32, #tpu.memory_space<vmem>>, vector<8x128xf32>
    tpu.vector_store %arg6[%c0_12, %c128], %13 {strides = array<i32>} : memref<8x256xf32, #tpu.memory_space<vmem>>, vector<8x128xf32>,
    %c0_13 = arith.constant 0 : index
    %c0_14 = arith.constant 0 : index
    %c0_15 = arith.constant 0 : index
    %15 = vector.load %arg5[%c0_13, %c0_14, %c0_15] : memref<1x8x128xf32, #tpu.memory_space<vmem>>, vector<1x8x128xf32>
    %16 = vector.shape_cast %15 : vector<1x8x128xf32> to vector<8x128xf32>
    %17 = vector.shape_cast %13 : vector<8x128xf32> to vector<1x8x128xf32>
    tpu.vector_store %arg5[%c0_13, %c0_14, %c0_15], %17 {strides = array<i32>} : memref<1x8x128xf32, #tpu.memory_space<vmem>>, vector<1x8x128xf32>,
    return
  }
  func.func @transform_0(%arg0: i32) -> (i32, i32, i32) {
    %c0_i32 = arith.constant 0 : i32
    %c0_i32_0 = arith.constant 0 : i32
    %c0_i32_1 = arith.constant 0 : i32
    return %arg0, %c0_i32, %c0_i32_0 : i32, i32, i32
  }
  func.func @transform_1(%arg0: i32) -> (i32, i32) {
    %c0_i32 = arith.constant 0 : i32
    %c0_i32_0 = arith.constant 0 : i32
    %c0_i32_1 = arith.constant 0 : i32
    return %c0_i32, %c0_i32_0 : i32, i32
  }
  func.func @transform_2(%arg0: i32) -> (i32, i32) {
    %c0_i32 = arith.constant 0 : i32
    %c0_i32_0 = arith.constant 0 : i32
    %c0_i32_1 = arith.constant 0 : i32
    return %c0_i32, %c0_i32_0 : i32, i32
  }
  func.func @transform_3(%arg0: i32) -> (i32, i32) {
    %c0_i32 = arith.constant 0 : i32
    %c0_i32_0 = arith.constant 0 : i32
    %c0_i32_1 = arith.constant 0 : i32
    return %c0_i32, %c0_i32_0 : i32, i32
  }
  func.func @transform_4(%arg0: i32) -> (i32, i32, i32) {
    %c0_i32 = arith.constant 0 : i32
    %c0_i32_0 = arith.constant 0 : i32
    %c0_i32_1 = arith.constant 0 : i32
    return %arg0, %c0_i32, %c0_i32_0 : i32, i32, i32
  }
}

</mosaic_0001>

<bundles_post_ra>
// kernel: tpu_custom_call.1
= control target key start
LH: loop header
LB: loop body
LE: loop exit
PB: predicated region body
PF: predicated region fallthrough
CT: control target
= control target key end

     0   :  { %9 = vsyncpa [#allocation4], 0  ;;  %s1041_s0 = inlined_call_operand.hbm [shape: f32[8,8,128], index: 0, kind: input, shape index: {}]   ;;  %s1042_s1 = inlined_call_operand.hbm [shape: f32[8,128], index: 1, kind: input, shape index: {}]   ;;  %s1043_s2 = inlined_call_operand.hbm [shape: f32[256,128], index: 2, kind: input, shape index: {}]   ;;  %s1044_s3 = inlined_call_operand.vmem [shape: f32[1,128], index: 3, kind: input, shape index: {}]   ;;  %s1045_s4 = inlined_call_operand.hbm [shape: f32[8,8,128], index: 4, kind: output, shape index: {}]  }
   0x1   :  { %11 = vsyncpa [#allocation4 + $0x1], 0 }
   0x2   :  { %12 = vsyncpa [#allocation7], 0 }
   0x3   :  { %13 = vsyncpa [#allocation5], 0 }
   0x4   :  { %15 = vsyncpa [#allocation5 + $0x1], 0  ;;  %s808_s15 = smov 0   ;;  %s810_s16 = smov 0  }
   0x5   :  { %s812_s17 = smov 0   ;;  %s814_s18 = smov 0  }
   0x6 LB: > { %s829_s19 = sadd.s32 4294967295, %s775_s18   ;;  %s465_s20 = sadd.s32 4294967294, %s775_s18   ;;  %s775_s18 = sphi %s814_s18, %s1065_s18   ;;  %s771_s17 = sphi %s812_s17, %s1064_s17   ;;  %s767_s16 = sphi %s810_s16, %s1063_s16   ;;  %s763_s15 = sphi %s808_s15, %s1062_s15  }
   0x7   : > { %p41_p0 = scmp.ne.s32.totalorder %s767_s16, %s763_s15  ;;  %p1046_p1 = scmp.eq.s32.totalorder %s829_s19, 0 }
   0x8   : > { %p134_p3 = scmp.eq.s32.totalorder %s465_s20, 7  ;;  %p466_p5 = scmp.ge.s32.totalorder %s775_s18, 1 }
   0x9   : > { %p838_p4 = por %p1046_p1, %p41_p0  ;;  %p141_p7 = scmp.lt.s32.totalorder %s775_s18, 9 }
   0xa   : > { %p843_p6 = por %p134_p3, %p41_p0  ;;  %s777_s24 = smov [#allocation6]  }
   0xb   : > { %s1049_s21 = scalar_select %p838_p4, 1, 0 }
   0xc   : > { %s1050_s22 = scalar_select %p843_p6, 1, 0 }
   0xd   : > { %p849_p9 = pnand %p466_p5, %p141_p7  ;;  %s154_s25 = sshll.u32 %s777_s24, 4  ;;  %s155_s25 = int_to_ptr.vmem [resolvable:$true] %s154_s25 }
   0xe   : > { %s778_s26 = smov [#allocation8]   ;;  %s619_s5 = scalar_lea.hbm %s1042_s1, 128 }
   0xf   : > { %s1051_s23 = scalar_select %p849_p9, 1, 0 }
  0x10   : > { %p562_p10 = pneg %p849_p9  ;;  %s164_s27 = sshll.u32 %s778_s26, 4  ;;  %s861_s27 = int_to_ptr.vmem [resolvable:$true] %s164_s27 }
  0x11   : > { %p620_p12 = scmp.ne.s32.totalorder %s1042_s1, %s619_s5  ;;  %p626_p5 = scmp.lt.u32.totalorder %s619_s5, %s1042_s1 }
  0x12   : > { %p857_p11 = pnand %p562_p10, %p1046_p1 }
  0x14   : > { %p621_p13 = pneg %p857_p11 }
  0x16   : > { %p622_p0 = pnand %p621_p13, %p620_p12 }
  0x18   : > { %p623_p3 = pneg %p622_p0 }
  0x1a   : > { %p628_p7 = pnand %p626_p5, %p623_p3 }
  0x1c   : > { %631 = shalt.err (!%p628_p7)
}
  0x1d   : > { %s632_s10 = scalar_lea.vmem %s155_s25, 128  ;;  %p640_p2 = scmp.lt.s32.totalorder %s155_s25, %s155_s25 }
  0x1e   : > { %p633_p10 = scmp.ne.s32.totalorder %s155_s25, %s632_s10  ;;  %p641_p6 = scmp.lt.s32.totalorder %s632_s10, %s632_s10 }
  0x20   : > { %p635_p8 = pnand %p633_p10, %p621_p13  ;;  %p642_p4 = por %p641_p6, %p640_p2 }
  0x22   : > { %p636_p1 = pneg %p635_p8 }
  0x24   : > { %p643_p9 = pnand %p642_p4, %p636_p1 }
  0x26   : > { %646 = shalt.err (!%p643_p9)
}
  0x27   : > { %565 = dma.hbm_to_vmem [thread:$0]  (!%p857_p11), %s1042_s1, 128, %s155_s25, [#allocation7]  }
  0x28   : > { %s647_s20 = scalar_lea.hbm %s1043_s2, 4096 }
  0x29   : > { %p648_p8 = scmp.ne.s32.totalorder %s1043_s2, %s647_s20  ;;  %p654_p4 = scmp.lt.u32.totalorder %s647_s20, %s1043_s2 }
  0x2b   : > { %p650_p2 = pnand %p648_p8, %p621_p13 }
  0x2d   : > { %p651_p1 = pneg %p650_p2 }
  0x2f   : > { %p656_p6 = pnand %p654_p4, %p651_p1 }
  0x31   : > { %659 = shalt.err (!%p656_p6)
}
  0x32   : > { %s660_s25 = scalar_lea.vmem %s861_s27, 4096  ;;  %p668_p3 = scmp.lt.s32.totalorder %s861_s27, %s861_s27 }
  0x33   : > { %p661_p9 = scmp.ne.s32.totalorder %s861_s27, %s660_s25  ;;  %p669_p5 = scmp.lt.s32.totalorder %s660_s25, %s660_s25 }
  0x35   : > { %p663_p12 = pnand %p661_p9, %p621_p13  ;;  %p670_p7 = por %p669_p5, %p668_p3 }
  0x37   : > { %p664_p0 = pneg %p663_p12 }
  0x39   : > { %p671_p10 = pnand %p670_p7, %p664_p0 }
  0x3b   : > { %674 = shalt.err (!%p671_p10)
}
  0x3c   : > { %s779_s5 = smov 128   ;;  %s780_s6 = smov 8  }
  0x3d   : > { %568 = dma.hbm_to_vmem [thread:$0]  (!%p857_p11), %s1043_s2, 4096, %s861_s27, [#allocation7], %s779_s5, %s779_s5, %s780_s6  }
  0x3e   : > { %s911_s9 = sadd.s32 1, %s775_s18   ;;  %s28_s10 = sadd.s32 1, %s771_s17 }
  0x3f   : > { %s25_s11 = ssub.s32 %s775_s18, %s911_s9  ;;  %p35_p13 = scmp.ne.s32.totalorder %s771_s17, %s767_s16 }
  0x40   : > { %p26_p8 = scmp.eq.s32.totalorder %s25_s11, 0  ;;  %p36_p2 = scmp.eq.s32.totalorder %s775_s18, 0 }
  0x41   : > { %p1053_p1 = scmp.eq.s32.totalorder %s829_s19, 7  ;;  %p579_p6 = scmp.lt.s32.totalorder %s775_s18, 8 }
  0x42   : > { %s927_s13 = scalar_select %p26_p8, %s771_s17, %s28_s10  }
  0x43   : > { %p921_p4 = por %p1053_p1, %p35_p13  ;;  %p37_p9 = por %p36_p2, %p35_p13 }
  0x44   : > { %s181_s28 = sand.u32 1, %s771_s17   ;;  %s471_s27 = sshll.u32 %s775_s18, 7 }
  0x45   : > { %s470_s14 = sshll.u32 %s181_s28, 3  ;;  %s934_s26 = scalar_lea.hbm %s1041_s0, %s471_s27 }
  0x46   : > { %s185_s29 = scalar_lea.vmem [#allocation3], %s470_s14  ;;  %p938_p11 = pnand %p579_p6, %p37_p9 }
  0x47   : > { %s192_s30 = sshll.u32 %s185_s29, 4  ;;  %s182_s5 = scalar_lea.sflag [#allocation4], %s181_s28  ;;  %s936_s30 = int_to_ptr.vmem [resolvable:$true] %s192_s30 }
  0x48   : > { %s675_s6 = scalar_lea.hbm %s934_s26, 128  ;;  %p677_p0 = pneg %p938_p11 }
  0x49   : > { %p676_p12 = scmp.ne.s32.totalorder %s934_s26, %s675_s6  ;;  %s680_s10 = scalar_lea.hbm %s1041_s0, 1024 }
  0x4a   : > { %p681_p7 = scmp.lt.u32.totalorder %s934_s26, %s1041_s0  ;;  %p682_p10 = scmp.lt.u32.totalorder %s680_s10, %s675_s6 }
  0x4b   : > { %p678_p3 = pnand %p677_p0, %p676_p12  ;;  %p684_p8 = scmp.lt.u32.totalorder %s675_s6, %s934_s26 }
  0x4c   : > { %p683_p13 = por %p682_p10, %p681_p7 }
  0x4d   : > { %p679_p5 = pneg %p678_p3 }
  0x4e   : > { %p685_p2 = por %p684_p8, %p683_p13 }
  0x50   : > { %p686_p1 = pnand %p685_p2, %p679_p5 }
  0x52   : > { %689 = shalt.err (!%p686_p1)
}
  0x53   : > { %s690_s28 = scalar_lea.vmem %s936_s30, 128  ;;  %s781_s27 = smov [#allocation3]  }
  0x54   : > { %p691_p6 = scmp.ne.s32.totalorder %s936_s30, %s690_s28  ;;  %s695_s20 = sshll.u32 %s781_s27, 4  ;;  %s696_s20 = int_to_ptr.vmem [resolvable:$false] %s695_s20 }
  0x55   : > { %s697_s24 = scalar_lea.vmem %s696_s20, 256  ;;  %p698_p3 = scmp.lt.s32.totalorder %s936_s30, %s696_s20 }
  0x56   : > { %p693_p9 = pnand %p691_p6, %p677_p0  ;;  %p699_p7 = scmp.lt.s32.totalorder %s697_s24, %s690_s28 }
  0x58   : > { %p694_p12 = pneg %p693_p9  ;;  %p700_p10 = por %p699_p7, %p698_p3 }
  0x5a   : > { %p701_p13 = pnand %p700_p10, %p694_p12 }
  0x5c   : > { %704 = shalt.err (!%p701_p13)
}
  0x5d   : > { %572 = dma.hbm_to_vmem [thread:$0]  (!%p938_p11), %s934_s26, 128, %s936_s30, %s182_s5  }
  0x5e   : > { %p1056_p5 = scmp.ne.s32.totalorder %s1051_s23, 0 }
  0x5f   : > { %s970_s29 = sand.u32 (!%p1056_p5), 1, %s767_s16   ;;  %p1057_p0 = scmp.ne.s32.totalorder (!%p1056_p5), %s1049_s21, 0 }
  0x60   : > { %201 = sbr.rel (%p1056_p5) target bundleno = 384 (0x180), region = 36  ;;  %s473_s6 = sshll.u32 (!%p1056_p5), %s970_s29, 3 }
  0x61   : > { %s204_s7 = scalar_lea.sflag (!%p1056_p5), [#allocation4], %s970_s29  ;;  %s974_s8 = scalar_lea.vmem (!%p1056_p5), [#allocation3], %s473_s6 }
  0x67   : > { %750 = dma.done.wait (%p1057_p0), %s204_s7, 128  }
  0x68   : > { %752 = vsyncadd (%p1057_p0), %s204_s7, 4294967168  ;;  %p1058_p11 = scmp.eq.s32.totalorder %s829_s19, 0 }
  0x6a   : > { %754 = dma.done.wait (%p1058_p11), [#allocation7], 4224   ;;  %p1059_p8 = pmov %p1058_p11 }
  0x6b   : > { %s984_s23 = scalar_lea.vmem [#allocation9], %s473_s6  ;;  %p1060_p2 = scmp.ne.s32.totalorder %s829_s19, 0 }
  0x6c   : > { %756 = vsyncadd (%p1059_p8), [#allocation7], 4294963072  ;;  %v244_v0 = vld [vmem:[#allocation6] sm:$0xff] (!%p1060_p2) }
  0x6d   : > { %243 = sbr.rel (%p1060_p2) target bundleno = 116 (0x74), region = 52  ;;  %245 = vst [vmem:[#allocation2 + $0x8] sm:$0xff] (!%p1060_p2), %v244_v0 }
  0x74 PF: > { %v266_v1 = vld [vmem:[#allocation8 + $0x80] sm:$0xff]  ;;  %v267_v2 = vld [vmem:[#allocation8 + $0x88] sm:$0xff]  ;;  %v268_v6 = vld [vmem:[#allocation8 + $0x90] sm:$0xff]  ;;  %s480_s30 = sshll.u32 %s829_s19, 7  ;;  %s376_s25 = sshll.u32 %s984_s23, 4  ;;  %s999_s25 = int_to_ptr.vmem [resolvable:$true] %s376_s25 }
  0x75   : > { %v250_v3 = vld [vmem:[#allocation8] sm:$0xff]  ;;  %v518_v4 = vpack.c.bf16 %v267_v2, %v266_v1  ;;  %v251_v5 = vld [vmem:[#allocation8 + $0x8] sm:$0xff]  ;;  %v269_v7 = vld [vmem:[#allocation8 + $0x98] sm:$0xff]  ;;  %s997_s11 = scalar_lea.hbm %s1045_s4, %s480_s30  ;;  %s363_s14 = scalar_lea.sflag [#allocation5], %s970_s29 }
  0x76   : > { %v520_v8 = vpack.c.bf16 %v251_v5, %v250_v3  ;;  %v522_v9 = vpack.c.bf16 %v269_v7, %v268_v6  ;;  %v252_v10 = vld [vmem:[#allocation8 + $0x10] sm:$0xff]  ;;  %v253_v11 = vld [vmem:[#allocation8 + $0x18] sm:$0xff]  ;;  %v270_v12 = vld [vmem:[#allocation8 + $0xa0] sm:$0xff]  ;;  %s705_s28 = scalar_lea.vmem %s999_s25, 128  ;;  %s782_s19 = smov [#allocation9]  }
  0x77   : > { %519 = vmatprep.subr.bf16.mxu0 %v518_v4  ;;  %v271_v13 = vld [vmem:[#allocation8 + $0xa8] sm:$0xff]  ;;  %v524_v14 = vpack.c.bf16 %v253_v11, %v252_v10  ;;  %v254_v16 = vld [vmem:[#allocation8 + $0x20] sm:$0xff]  ;;  %v272_v18 = vld [vmem:[#allocation8 + $0xb0] sm:$0xff]  ;;  %p706_p1 = scmp.ne.s32.totalorder %s999_s25, %s705_s28  ;;  %s709_s27 = sshll.u32 %s782_s19, 4  ;;  %s710_s27 = int_to_ptr.vmem [resolvable:$false] %s709_s27 }
  0x78   : > { %521 = vmatpush3.bf16.msra.mxu0 %v520_v8  ;;  %v526_v15 = vpack.c.bf16 %v271_v13, %v270_v12  ;;  %v255_v17 = vld [vmem:[#allocation8 + $0x28] sm:$0xff]  ;;  %v273_v19 = vld [vmem:[#allocation8 + $0xb8] sm:$0xff]  ;;  %v256_v22 = vld [vmem:[#allocation8 + $0x30] sm:$0xff]  ;;  %s711_s20 = scalar_lea.vmem %s710_s27, 256  ;;  %p712_p12 = scmp.lt.s32.totalorder %s999_s25, %s710_s27 }
  0x79   : > { %523 = vmatprep.subr.bf16.mxu0 %v522_v9  ;;  %v528_v20 = vpack.c.bf16 %v255_v17, %v254_v16  ;;  %v530_v21 = vpack.c.bf16 %v273_v19, %v272_v18  ;;  %v257_v23 = vld [vmem:[#allocation8 + $0x38] sm:$0xff]  ;;  %v274_v24 = vld [vmem:[#allocation8 + $0xc0] sm:$0xff]  ;;  %v275_v25 = vld [vmem:[#allocation8 + $0xc8] sm:$0xff]  ;;  %p707_p6 = pnand %p706_p1, %p921_p4  ;;  %p713_p3 = scmp.lt.s32.totalorder %s711_s20, %s705_s28 }
  0x7a   : > { %v249_v26 = vld [vmem:[#allocation2 + $0x8] sm:$0xff]  ;;  %v246_v27 = vld [vmem:[%s974_s8] sm:$0xff]  ;;  %v532_v28 = vpack.c.bf16 %v257_v23, %v256_v22  ;;  %v534_v29 = vpack.c.bf16 %v275_v25, %v274_v24  ;;  %v277_v33 = vld [vmem:[#allocation8 + $0xd8] sm:$0xff] }
  0x7b   : > { %353 = vmatprep.mubr.f32.mxu0 %v249_v26  ;;  %v258_v30 = vld [vmem:[#allocation8 + $0x40] sm:$0xff]  ;;  %v259_v31 = vld [vmem:[#allocation8 + $0x48] sm:$0xff]  ;;  %v276_v32 = vld [vmem:[#allocation8 + $0xd0] sm:$0xff]  ;;  %p708_p9 = pneg %p707_p6  ;;  %p714_p7 = por %p713_p3, %p712_p12 }
  0x7c   : > { %525 = vmatpush3.bf16.msra.mxu0 %v524_v14  ;;  %v536_v34 = vpack.c.bf16 %v259_v31, %v258_v30  ;;  %v538_v35 = vpack.c.bf16 %v277_v33, %v276_v32  ;;  %v260_v36 = vld [vmem:[#allocation8 + $0x50] sm:$0xff]  ;;  %v261_v37 = vld [vmem:[#allocation8 + $0x58] sm:$0xff]  ;;  %v278_v38 = vld [vmem:[#allocation8 + $0xe0] sm:$0xff] }
  0x7d   : > { %527 = vmatprep.subr.bf16.mxu0 %v526_v15  ;;  %v279_v39 = vld [vmem:[#allocation8 + $0xe8] sm:$0xff]  ;;  %v540_v40 = vpack.c.bf16 %v261_v37, %v260_v36  ;;  %v262_v42 = vld [vmem:[#allocation8 + $0x60] sm:$0xff]  ;;  %v280_v44 = vld [vmem:[#allocation8 + $0xf0] sm:$0xff]  ;;  %p715_p10 = pnand %p714_p7, %p708_p9 }
  0x7e   : > { %v542_v41 = vpack.c.bf16 %v279_v39, %v278_v38  ;;  %v263_v43 = vld [vmem:[#allocation8 + $0x68] sm:$0xff]  ;;  %v281_v45 = vld [vmem:[#allocation8 + $0xf8] sm:$0xff]  ;;  %v264_v48 = vld [vmem:[#allocation8 + $0x70] sm:$0xff] }
  0x7f   : > { %v544_v46 = vpack.c.bf16 %v263_v43, %v262_v42  ;;  %v546_v47 = vpack.c.bf16 %v281_v45, %v280_v44  ;;  %v265_v49 = vld [vmem:[#allocation8 + $0x78] sm:$0xff] }
  0x80   : > { %529 = vmatpush3.bf16.msra.mxu0 %v528_v20  ;;  %v548_v50 = vpack.c.bf16 %v265_v49, %v264_v48  ;;  %v478_v52 = vld [vmem:[%s1044_s3] ss:$0 sm:$0xff] }
  0x81   : > { %531 = vmatprep.subr.bf16.mxu0 %v530_v21 }
  0x84   : > { %533 = vmatpush3.bf16.msra.mxu0 %v532_v28 }
  0x85   : > { %535 = vmatprep.subr.bf16.mxu0 %v534_v29 }
  0x88   : > { %537 = vmatpush3.bf16.msra.mxu0 %v536_v34 }
  0x89   : > { %539 = vmatprep.subr.bf16.mxu0 %v538_v35 }
  0x8c   : > { %541 = vmatpush3.bf16.msra.mxu0 %v540_v40 }
  0x8d   : > { %543 = vmatprep.subr.bf16.mxu0 %v542_v41 }
  0x90   : > { %545 = vmatpush3.bf16.msra.mxu0 %v544_v46 }
  0x91   : > { %547 = vmatprep.subr.bf16.mxu0 %v546_v47 }
  0x94   : > { %549 = vmatpush3.bf16.msra.mxu0 %v548_v50 }
  0x97   : > { %354 = vmatmul.mubr.f32.vlgmr.msra.gmra.mrb[0].mxu0 %v246_v27 }
 0x16a   : > { %v515_v51 = vpop.f32.mrb[0].mxu0 }
 0x16b   : > { %v516_v53 = vpop.f32.mrb[1].mxu0 }
 0x16c   : > { %v517_v54 = vadd.f32 %v516_v53, %v515_v51 }
 0x16e   : > { %v356_v55 = vadd.f32 %v517_v54, %v478_v52 }
 0x170   : > { %v359_v56 = vmax.f32 %v356_v55, 0.0 }
 0x172   : > { %360 = vst [vmem:[#allocation2 + $0x8] sm:$0xff] %v359_v56  ;;  %361 = vst [vmem:[%s984_s23] sm:$0xff] %v359_v56 }
 0x173   : > { %718 = shalt.err (!%p715_p10)
}
 0x174   : > { %s719_s24 = scalar_lea.hbm %s997_s11, 128  ;;  %s723_s7 = scalar_lea.hbm %s1045_s4, 1024 }
 0x175   : > { %p720_p13 = scmp.ne.s32.totalorder %s997_s11, %s719_s24  ;;  %p724_p11 = scmp.lt.u32.totalorder %s997_s11, %s1045_s4 }
 0x176   : > { %p725_p8 = scmp.lt.u32.totalorder %s723_s7, %s719_s24  ;;  %p727_p1 = scmp.lt.u32.totalorder %s719_s24, %s997_s11 }
 0x177   : > { %p721_p5 = pnand %p720_p13, %p921_p4 }
 0x178   : > { %p726_p2 = por %p725_p8, %p724_p11 }
 0x179   : > { %p722_p0 = pneg %p721_p5 }
 0x17a   : > { %p728_p6 = por %p727_p1, %p726_p2 }
 0x17c   : > { %p729_p9 = pnand %p728_p6, %p722_p0 }
 0x17e   : > { %732 = shalt.err (!%p729_p9)
}
 0x17f   : > { %560 = dma.vmem_to_hbm [thread:$0]  (%p921_p4), %s999_s25, 128, %s997_s11, %s363_s14  }
 0x180 PF: > { %p582_p12 = scmp.ge.s32.totalorder %s775_s18, 2  ;;  %s388_s21 = sand.u32 1, %s763_s15  }
 0x181   : > { %p1061_p3 = scmp.ne.s32.totalorder %s1050_s22, 0  ;;  %s389_s26 = scalar_lea.sflag [#allocation5], %s388_s21 }
 0x183   : > { %p574_p7 = pnand %p582_p12, %p1061_p3 }
 0x185   : > { %758 = dma.done.wait (!%p574_p7), %s389_s26, 128  }
 0x186   : > { %760 = vsyncadd (!%p574_p7), %s389_s26, 4294967168  ;;  %p18_p10 = scmp.ge.s32.totalorder %s911_s9, 10   ;;  %s1062_s15 = smov %s767_s16 }
 0x187   : > { %s1063_s16 = smov %s771_s17  ;;  %s1064_s17 = smov %s927_s13 }
 0x188   : > { %s1065_s18 = smov %s911_s9  ;;  %20 = sbr.rel (!%p18_p10) target bundleno = 6 (0x6), region = 93 }
 0x18f   :  { %394 = vsyncpa [#allocation4], 1 }
 0x190   :  { %396 = vsyncpa [#allocation4 + $0x1], 1 }
 0x191   :  { %397 = vsyncpa [#allocation7], 1 }
 0x192   :  { %398 = vsyncpa [#allocation5], 1 }
 0x193   :  { %400 = vsyncpa [#allocation5 + $0x1], 1 }

</bundles_post_ra>
